<compile_context>
chip_gen: v7x
topology: tpu7x:2x2x1
jax: 0.10.0
libtpu: 0.0.40
codegen_flags: <defaults>
</compile_context>

<pallas_src>
import jax
import jax.numpy as jnp
from jax import lax
from jax.experimental import pallas as pl
from jax.experimental.pallas import tpu as pltpu


def _reduce_state_kernel(x_ref, w_ref, b_ref, oh_ref, oc_ref):
    # Grid step s selects the stream: s=0 -> h / reduce_h, s=1 -> c / reduce_c.
    # x_ref: (2, B, H)  the two bi-LSTM directions of the current stream (bf16)
    # w_ref: (H, 2H)    PyTorch (out_features, in_features) weight of this stream (bf16)
    # b_ref: (1, H)     bias of this stream (f32)
    # oh_ref/oc_ref: (1, B, H) outputs (f32); written on their own step only
    # (constant output block index across the "arbitrary" axis keeps them
    # resident in VMEM and written back once at grid end).
    s = pl.program_id(0)
    H = x_ref.shape[-1]

    # Trans-B contraction over the last dims, split at H so the (B, 2H)
    # direction-concat never materializes. Static ref slices of the weight
    # start at lane offsets that are multiples of H (lane-aligned), so they
    # lower to direct sub-region loads.
    dn = (((1,), (1,)), ((), ()))  # contract last dim of x with last dim of W
    y = lax.dot_general(x_ref[0], w_ref[:, :H], dn,
                        preferred_element_type=jnp.float32)
    y = y + lax.dot_general(x_ref[1], w_ref[:, H:], dn,
                            preferred_element_type=jnp.float32)   # (B, H) f32

    # f32 epilogue (v5e has no bf16 VPU): bias broadcast over B + ReLU.
    y = jnp.maximum(y + b_ref[...], 0.0)

    @pl.when(s == 0)
    def _():
        oh_ref[...] = y[None, ...].astype(oh_ref.dtype)

    @pl.when(s == 1)
    def _():
        oc_ref[...] = y[None, ...].astype(oc_ref.dtype)


def reduce_state(h, c, w_h, b_h, w_c, b_c, *, compute_dtype=jnp.bfloat16):
    """ReduceState forward.

    h, c: (2, B, H) float32 bi-LSTM final states.
    w_h, w_c: (H, 2H) PyTorch-layout (out, in) weights; b_h, b_c: (H,) biases.
    Returns (out_h, out_c), each (1, B, H) float32.
    """
    num_dir, B, H = h.shape
    assert num_dir == 2
    assert w_h.shape == (H, 2 * H) and w_c.shape == (H, 2 * H)
    assert b_h.shape == (H,) and b_c.shape == (H,)
    # Production hidden_dim (256) is lane-aligned; H % 128 == 0 keeps every
    # store full-width. Non-aligned H still runs correctly (block == array).

    # Stack the per-stream params/states along a leading stream axis so the
    # 2-step grid can select the h-stream vs c-stream block via index_map, and
    # cast the MXU inputs to bf16 (accumulation + epilogue stay f32). In a
    # full model these stacks/casts fold into the surrounding jit / are done
    # once at weight-packing time.
    x = jnp.stack([h, c]).astype(compute_dtype)        # (2, 2, B, H)
    w = jnp.stack([w_h, w_c]).astype(compute_dtype)    # (2, H, 2H)
    b = jnp.stack([b_h, b_c]).reshape(2, 1, H)         # (2, 1, H) f32

    out_h, out_c = pl.pallas_call(
        _reduce_state_kernel,
        out_shape=(jax.ShapeDtypeStruct((1, B, H), h.dtype),
                   jax.ShapeDtypeStruct((1, B, H), c.dtype)),
        grid_spec=pltpu.PrefetchScalarGridSpec(
            num_scalar_prefetch=0,
            grid=(2,),  # stream axis: 0 = h, 1 = c
            in_specs=[
                # Leading None dim = squeezed stream index selected per step.
                pl.BlockSpec((None, 2, B, H), lambda s: (s, 0, 0, 0)),   # states
                pl.BlockSpec((None, H, 2 * H), lambda s: (s, 0, 0)),     # weight
                pl.BlockSpec((None, 1, H), lambda s: (s, 0, 0)),         # bias
            ],
            out_specs=(
                pl.BlockSpec((1, B, H), lambda s: (0, 0, 0)),            # out_h
                pl.BlockSpec((1, B, H), lambda s: (0, 0, 0)),            # out_c
            ),
        ),
        compiler_params=pltpu.CompilerParams(
            dimension_semantics=("arbitrary",)),
    )(x, w, b)
    return out_h, out_c


if __name__ == "__main__":
    # Small but lane/sublane-aligned demo shape (production uses H=256, B~64).
    hidden_dim = 128
    batch = 8
    trunc_norm_init_std = 1e-4

    key = jax.random.PRNGKey(0)
    k1, k2, k3, k4, k5, k6 = jax.random.split(key, 6)

    # LSTM final states: (num_directions=2, batch, hidden_dim)
    h = jax.random.normal(k1, (2, batch, hidden_dim), dtype=jnp.float32)
    c = jax.random.normal(k2, (2, batch, hidden_dim), dtype=jnp.float32)

    # Linear params (PyTorch convention: weight (out, in), bias (out,)),
    # initialized ~ N(0, trunc_norm_init_std) as in init_linear_wt.
    w_h = trunc_norm_init_std * jax.random.normal(
        k3, (hidden_dim, 2 * hidden_dim), dtype=jnp.float32)
    b_h = trunc_norm_init_std * jax.random.normal(
        k4, (hidden_dim,), dtype=jnp.float32)
    w_c = trunc_norm_init_std * jax.random.normal(
        k5, (hidden_dim, 2 * hidden_dim), dtype=jnp.float32)
    b_c = trunc_norm_init_std * jax.random.normal(
        k6, (hidden_dim,), dtype=jnp.float32)

    out_h, out_c = reduce_state(h, c, w_h, b_h, w_c, b_c)
    jax.block_until_ready((out_h, out_c))

    # Reference check in plain JAX (mirrors the PyTorch forward exactly, f32).
    # Kernel uses bf16 MXU inputs with f32 accumulation, so tolerance reflects
    # bf16 input quantization (typical error here is ~1e-5 on values ~1e-3).
    h_in = jnp.transpose(h, (1, 0, 2)).reshape(batch, 2 * hidden_dim)
    c_in = jnp.transpose(c, (1, 0, 2)).reshape(batch, 2 * hidden_dim)
    ref_h = jnp.maximum(h_in @ w_h.T + b_h, 0.0)[None, ...]
    ref_c = jnp.maximum(c_in @ w_c.T + b_c, 0.0)[None, ...]
    assert out_h.shape == (1, batch, hidden_dim)
    assert out_c.shape == (1, batch, hidden_dim)
    assert jnp.allclose(out_h, ref_h, rtol=5e-2, atol=2e-4)
    assert jnp.allclose(out_c, ref_c, rtol=5e-2, atol=2e-4)

    print("KERNEL_OK")
</pallas_src>

<mosaic_0001>
module attributes {stable_mosaic.version = 11 : i64} {
  func.func @_reduce_state_kernel(%arg0: i32, %arg1: memref<1x2x8x128xbf16, #tpu.memory_space<vmem>>, %arg2: memref<1x128x256xbf16, #tpu.memory_space<vmem>>, %arg3: memref<1x1x128xf32, #tpu.memory_space<vmem>>, %arg4: memref<1x8x128xf32, #tpu.memory_space<vmem>>, %arg5: memref<1x8x128xf32, #tpu.memory_space<vmem>>) attributes {dimension_semantics = [#tpu.dimension_semantics<arbitrary>], iteration_bounds = array<i64: 2>, scalar_prefetch = 0 : i64, scratch_operands = 0 : i64, tpu.core_type = #tpu.core_type<tc>, window_params = [{transform_indices = @transform_0, window_bounds = array<i64: 1, 2, 8, 128>}, {transform_indices = @transform_1, window_bounds = array<i64: 1, 128, 256>}, {transform_indices = @transform_2, window_bounds = array<i64: 1, 1, 128>}, {pipeline_mode = #tpu.pipeline_mode<synchronous>, transform_indices = @transform_3, window_bounds = array<i64: 1, 8, 128>}, {pipeline_mode = #tpu.pipeline_mode<synchronous>, transform_indices = @transform_4, window_bounds = array<i64: 1, 8, 128>}]} {
    %c0 = arith.constant 0 : index
    %c0_0 = arith.constant 0 : index
    %c0_1 = arith.constant 0 : index
    %c0_2 = arith.constant 0 : index
    %0 = vector.load %arg1[%c0, %c0_0, %c0_1, %c0_2] : memref<1x2x8x128xbf16, #tpu.memory_space<vmem>>, vector<1x1x8x128xbf16>
    %1 = vector.shape_cast %0 : vector<1x1x8x128xbf16> to vector<8x128xbf16>
    %c0_3 = arith.constant 0 : index
    %c0_4 = arith.constant 0 : index
    %c0_5 = arith.constant 0 : index
    %2 = vector.load %arg2[%c0_3, %c0_4, %c0_5] : memref<1x128x256xbf16, #tpu.memory_space<vmem>>, vector<1x128x128xbf16>
    %3 = vector.shape_cast %2 : vector<1x128x128xbf16> to vector<128x128xbf16>
    %cst = arith.constant dense<0.000000e+00> : vector<8x128xf32>
    %4 = tpu.matmul %1, %3, %cst {dimension_numbers = #tpu.dot_dimension_numbers<[1], [1], [0], [0], [0, 0, 1, 0], [], []>} : vector<8x128xbf16>, vector<128x128xbf16>, vector<8x128xf32> -> vector<8x128xf32>
    %c0_6 = arith.constant 0 : index
    %c1 = arith.constant 1 : index
    %c0_7 = arith.constant 0 : index
    %c0_8 = arith.constant 0 : index
    %5 = vector.load %arg1[%c0_6, %c1, %c0_7, %c0_8] : memref<1x2x8x128xbf16, #tpu.memory_space<vmem>>, vector<1x1x8x128xbf16>
    %6 = vector.shape_cast %5 : vector<1x1x8x128xbf16> to vector<8x128xbf16>
    %c0_9 = arith.constant 0 : index
    %c0_10 = arith.constant 0 : index
    %c128 = arith.constant 128 : index
    %7 = vector.load %arg2[%c0_9, %c0_10, %c128] : memref<1x128x256xbf16, #tpu.memory_space<vmem>>, vector<1x128x128xbf16>
    %8 = vector.shape_cast %7 : vector<1x128x128xbf16> to vector<128x128xbf16>
    %cst_11 = arith.constant dense<0.000000e+00> : vector<8x128xf32>
    %9 = tpu.matmul %6, %8, %cst_11 {dimension_numbers = #tpu.dot_dimension_numbers<[1], [1], [0], [0], [0, 0, 1, 0], [], []>} : vector<8x128xbf16>, vector<128x128xbf16>, vector<8x128xf32> -> vector<8x128xf32>
    %10 = arith.addf %4, %9 : vector<8x128xf32>
    %c0_12 = arith.constant 0 : index
    %c0_13 = arith.constant 0 : index
    %c0_14 = arith.constant 0 : index
    %11 = vector.load %arg3[%c0_12, %c0_13, %c0_14] : memref<1x1x128xf32, #tpu.memory_space<vmem>>, vector<1x1x128xf32>
    %12 = vector.shape_cast %11 : vector<1x1x128xf32> to vector<1x128xf32>
    %13 = vector.broadcast %12 : vector<1x128xf32> to vector<8x128xf32>
    %14 = arith.addf %10, %13 : vector<8x128xf32>
    %cst_15 = arith.constant 0.000000e+00 : f32
    %15 = vector.broadcast %cst_15 : f32 to vector<8x128xf32>
    %16 = arith.maximumf %14, %15 : vector<8x128xf32>
    %c0_i32 = arith.constant 0 : i32
    %17 = arith.cmpi eq, %arg0, %c0_i32 : i32
    %18 = arith.extui %17 : i1 to i32
    %c0_i32_16 = arith.constant 0 : i32
    %19 = arith.cmpi ne, %18, %c0_i32_16 : i32
    scf.if %19 {
      %23 = vector.shape_cast %16 : vector<8x128xf32> to vector<1x8x128xf32>
      %c0_18 = arith.constant 0 : index
      %c0_19 = arith.constant 0 : index
      %c0_20 = arith.constant 0 : index
      %24 = vector.load %arg4[%c0_18, %c0_19, %c0_20] : memref<1x8x128xf32, #tpu.memory_space<vmem>>, vector<1x8x128xf32>
      tpu.vector_store %arg4[%c0_18, %c0_19, %c0_20], %23 {strides = array<i32>} : memref<1x8x128xf32, #tpu.memory_space<vmem>>, vector<1x8x128xf32>,
    } else {
    }
    %c1_i32 = arith.constant 1 : i32
    %20 = arith.cmpi eq, %arg0, %c1_i32 : i32
    %21 = arith.extui %20 : i1 to i32
    %c0_i32_17 = arith.constant 0 : i32
    %22 = arith.cmpi ne, %21, %c0_i32_17 : i32
    scf.if %22 {
      %23 = vector.shape_cast %16 : vector<8x128xf32> to vector<1x8x128xf32>
      %c0_18 = arith.constant 0 : index
      %c0_19 = arith.constant 0 : index
      %c0_20 = arith.constant 0 : index
      %24 = vector.load %arg5[%c0_18, %c0_19, %c0_20] : memref<1x8x128xf32, #tpu.memory_space<vmem>>, vector<1x8x128xf32>
      tpu.vector_store %arg5[%c0_18, %c0_19, %c0_20], %23 {strides = array<i32>} : memref<1x8x128xf32, #tpu.memory_space<vmem>>, vector<1x8x128xf32>,
    } else {
    }
    return
  }
  func.func @transform_0(%arg0: i32) -> (i32, i32, i32, i32) {
    %c0_i32 = arith.constant 0 : i32
    %c0_i32_0 = arith.constant 0 : i32
    %c0_i32_1 = arith.constant 0 : i32
    %c0_i32_2 = arith.constant 0 : i32
    return %arg0, %c0_i32, %c0_i32_0, %c0_i32_1 : i32, i32, i32, i32
  }
  func.func @transform_1(%arg0: i32) -> (i32, i32, i32) {
    %c0_i32 = arith.constant 0 : i32
    %c0_i32_0 = arith.constant 0 : i32
    %c0_i32_1 = arith.constant 0 : i32
    return %arg0, %c0_i32, %c0_i32_0 : i32, i32, i32
  }
  func.func @transform_2(%arg0: i32) -> (i32, i32, i32) {
    %c0_i32 = arith.constant 0 : i32
    %c0_i32_0 = arith.constant 0 : i32
    %c0_i32_1 = arith.constant 0 : i32
    return %arg0, %c0_i32, %c0_i32_0 : i32, i32, i32
  }
  func.func @transform_3(%arg0: i32) -> (i32, i32, i32) {
    %c0_i32 = arith.constant 0 : i32
    %c0_i32_0 = arith.constant 0 : i32
    %c0_i32_1 = arith.constant 0 : i32
    %c0_i32_2 = arith.constant 0 : i32
    return %c0_i32, %c0_i32_0, %c0_i32_1 : i32, i32, i32
  }
  func.func @transform_4(%arg0: i32) -> (i32, i32, i32) {
    %c0_i32 = arith.constant 0 : i32
    %c0_i32_0 = arith.constant 0 : i32
    %c0_i32_1 = arith.constant 0 : i32
    %c0_i32_2 = arith.constant 0 : i32
    return %c0_i32, %c0_i32_0, %c0_i32_1 : i32, i32, i32
  }
}

</mosaic_0001>

<bundles_post_ra>
// kernel: tpu_custom_call.1
= control target key start
LH: loop header
LB: loop body
LE: loop exit
PB: predicated region body
PF: predicated region fallthrough
CT: control target
= control target key end

     0   :  { %10 = vsyncpa [#allocation3], 0  ;;  %s1197_s0 = inlined_call_operand.hbm [shape: bf16[2,2,8,128], index: 0, kind: input, shape index: {}]   ;;  %s1198_s1 = inlined_call_operand.hbm [shape: bf16[2,128,256], index: 1, kind: input, shape index: {}]   ;;  %s1199_s2 = inlined_call_operand.vmem [shape: f32[2,1,128], index: 2, kind: input, shape index: {}]   ;;  %s1200_s3 = inlined_call_operand.hbm [shape: f32[1,8,128], index: 3, kind: output, shape index: {0}]   ;;  %s1201_s4 = inlined_call_operand.hbm [shape: f32[1,8,128], index: 4, kind: output, shape index: {1}]  }
   0x1   :  { %12 = vsyncpa [#allocation3 + $0x1], 0 }
   0x2   :  { %13 = vsyncpa [#allocation6], 0 }
   0x3   :  { %15 = vsyncpa [#allocation6 + $0x1], 0 }
   0x4   :  { %16 = vsyncpa [#allocation4], 0 }
   0x5   :  { %17 = vsyncpa [#allocation9], 0  ;;  %s972_s15 = smov 0   ;;  %s974_s16 = smov 0  }
   0x6   :  { %s976_s17 = smov 0   ;;  %s978_s18 = smov 0  }
   0x7 LB: > { %s991_s19 = sadd.s32 4294967295, %s935_s18   ;;  %s994_s20 = sadd.s32 1, %s935_s18   ;;  %s935_s18 = sphi %s978_s18, %s1211_s18   ;;  %s931_s17 = sphi %s976_s17, %s1210_s17   ;;  %s927_s16 = sphi %s974_s16, %s1209_s16   ;;  %s923_s15 = sphi %s972_s15, %s1208_s15  }
   0x8   : > { %s27_s21 = ssub.s32 %s935_s18, %s994_s20  ;;  %s30_s22 = sadd.s32 1, %s931_s17 }
   0x9   : > { %p28_p0 = scmp.eq.s32.totalorder %s27_s21, 0  ;;  %p37_p1 = scmp.ne.s32.totalorder %s931_s17, %s927_s16 }
   0xa   : > { %p38_p2 = scmp.eq.s32.totalorder %s935_s18, 0  ;;  %p43_p3 = scmp.ne.s32.totalorder %s927_s16, %s923_s15 }
   0xb   : > { %s1004_s23 = scalar_select %p28_p0, %s931_s17, %s30_s22  }
   0xc   : > { %p39_p4 = por %p38_p2, %p37_p1  ;;  %p44_p5 = scmp.eq.s32.totalorder %s991_s19, 0 }
   0xd   : > { %p716_p6 = scmp.lt.s32.totalorder %s935_s18, 2  ;;  %s1013_s25 = sand.u32 1, %s931_s17  }
   0xe   : > { %p1008_p7 = por %p44_p5, %p43_p3  ;;  %s602_s26 = sshll.u32 %s1013_s25, 3 }
   0xf   : > { %s637_s27 = sshll.u32 %s935_s18, 7  ;;  %s165_s5 = scalar_lea.vmem [#allocation2], %s602_s26 }
  0x10   : > { %s1203_s24 = scalar_select %p1008_p7, 1, 0 }
  0x11   : > { %s1020_s30 = scalar_lea.hbm %s1197_s0, %s637_s27  ;;  %s172_s6 = sshll.u32 %s165_s5, 4  ;;  %s1022_s6 = int_to_ptr.vmem [resolvable:$true] %s172_s6 }
  0x12   : > { %p1024_p8 = pnand %p716_p6, %p39_p4  ;;  %s162_s8 = scalar_lea.sflag [#allocation3], %s1013_s25 }
  0x13   : > { %s777_s9 = scalar_lea.hbm %s1020_s30, 128  ;;  %s782_s12 = scalar_lea.hbm %s1197_s0, 256 }
  0x14   : > { %p778_p10 = scmp.ne.s32.totalorder %s1020_s30, %s777_s9  ;;  %p779_p11 = pneg %p1024_p8 }
  0x15   : > { %p783_p0 = scmp.lt.u32.totalorder %s1020_s30, %s1197_s0  ;;  %p784_p1 = scmp.lt.u32.totalorder %s782_s12, %s777_s9 }
  0x16   : > { %p780_p12 = pnand %p779_p11, %p778_p10  ;;  %p786_p3 = scmp.lt.u32.totalorder %s777_s9, %s1020_s30 }
  0x17   : > { %p785_p2 = por %p784_p1, %p783_p0 }
  0x18   : > { %p781_p13 = pneg %p780_p12 }
  0x19   : > { %p787_p4 = por %p786_p3, %p785_p2 }
  0x1b   : > { %p788_p5 = pnand %p787_p4, %p781_p13 }
  0x1d   : > { %791 = shalt.err (!%p788_p5)
}
  0x1e   : > { %s792_s15 = scalar_lea.vmem %s1022_s6, 128  ;;  %s937_s21 = smov [#allocation2]  }
  0x1f   : > { %p793_p6 = scmp.ne.s32.totalorder %s1022_s6, %s792_s15  ;;  %s797_s22 = sshll.u32 %s937_s21, 4  ;;  %s798_s22 = int_to_ptr.vmem [resolvable:$false] %s797_s22 }
  0x20   : > { %s799_s26 = scalar_lea.vmem %s798_s22, 256  ;;  %p800_p9 = scmp.lt.s32.totalorder %s1022_s6, %s798_s22 }
  0x21   : > { %p795_p10 = pnand %p793_p6, %p779_p11  ;;  %p801_p0 = scmp.lt.s32.totalorder %s799_s26, %s792_s15 }
  0x23   : > { %p796_p12 = pneg %p795_p10  ;;  %p802_p1 = por %p801_p0, %p800_p9 }
  0x25   : > { %p803_p2 = pnand %p802_p1, %p796_p12 }
  0x27   : > { %806 = shalt.err (!%p803_p2)
}
  0x28   : > { %s938_s27 = smov 64   ;;  %s939_s28 = smov 4  }
  0x29   : > { %712 = dma.hbm_to_vmem [thread:$0]  (!%p1024_p8), %s1020_s30, 128, %s1022_s6, %s162_s8, %s938_s27, %s938_s27, %s939_s28  }
  0x2a   : > { %p207_p13 = scmp.lt.s32.totalorder %s935_s18, 3  ;;  %s605_s29 = sshll.u32 %s1013_s25, 7 }
  0x2b   : > { %s638_s5 = sshll.u32 %s935_s18, 11  ;;  %p1205_p9 = scmp.ge.s32.totalorder %s935_s18, 1 }
  0x2c   : > { %s1069_s12 = scalar_lea.hbm %s1198_s1, %s638_s5  ;;  %s186_s13 = scalar_lea.vmem [#allocation5], %s605_s29 }
  0x2d   : > { %p1062_p3 = pnand %p1205_p9, %p207_p13  ;;  %s193_s14 = sshll.u32 %s186_s13, 4  ;;  %s1071_s14 = int_to_ptr.vmem [resolvable:$true] %s193_s14 }
  0x2e   : > { %s183_s30 = scalar_lea.sflag [#allocation6], %s1013_s25  ;;  %s807_s6 = scalar_lea.hbm %s1069_s12, 2048 }
  0x2f   : > { %p808_p4 = scmp.ne.s32.totalorder %s1069_s12, %s807_s6  ;;  %s812_s15 = scalar_lea.hbm %s1198_s1, 4096 }
  0x30   : > { %p813_p10 = scmp.lt.u32.totalorder %s1069_s12, %s1198_s1  ;;  %p814_p12 = scmp.lt.u32.totalorder %s812_s15, %s807_s6 }
  0x31   : > { %p810_p5 = pnand %p808_p4, %p779_p11  ;;  %p816_p1 = scmp.lt.u32.totalorder %s807_s6, %s1069_s12 }
  0x32   : > { %p815_p0 = por %p814_p12, %p813_p10 }
  0x33   : > { %p811_p6 = pneg %p810_p5 }
  0x34   : > { %p817_p2 = por %p816_p1, %p815_p0 }
  0x36   : > { %p818_p13 = pnand %p817_p2, %p811_p6 }
  0x38   : > { %821 = shalt.err (!%p818_p13)
}
  0x39   : > { %s822_s26 = scalar_lea.vmem %s1071_s14, 2048  ;;  %s940_s27 = smov [#allocation5]  }
  0x3a   : > { %p823_p9 = scmp.ne.s32.totalorder %s1071_s14, %s822_s26  ;;  %s827_s28 = sshll.u32 %s940_s27, 4  ;;  %s828_s28 = int_to_ptr.vmem [resolvable:$false] %s827_s28 }
  0x3b   : > { %s829_s29 = scalar_lea.vmem %s828_s28, 4096  ;;  %p830_p7 = scmp.lt.s32.totalorder %s1071_s14, %s828_s28 }
  0x3c   : > { %p825_p4 = pnand %p823_p9, %p779_p11  ;;  %p831_p10 = scmp.lt.s32.totalorder %s829_s29, %s822_s26 }
  0x3e   : > { %p826_p5 = pneg %p825_p4  ;;  %p832_p12 = por %p831_p10, %p830_p7 }
  0x40   : > { %p833_p0 = pnand %p832_p12, %p826_p5 }
  0x42   : > { %836 = shalt.err (!%p833_p0)
}
  0x43   : > { %s941_s5 = smov 128   ;;  %s942_s10 = smov 8  }
  0x44   : > { %715 = dma.hbm_to_vmem [thread:$0]  (!%p1024_p8), %s1069_s12, 2048, %s1071_s14, %s183_s30, %s941_s5, %s941_s5, %s942_s10  }
  0x45   : > { %211 = sbr.rel (%p1062_p3) target bundleno = 422 (0x1a6), region = 32  ;;  %s213_s11 = sand.u32 (!%p1062_p3), 1, %s927_s16  }
  0x46   : > { %s609_s13 = sshll.u32 (!%p1062_p3), %s213_s11, 3  ;;  %s214_s6 = scalar_lea.sflag (!%p1062_p3), [#allocation3], %s213_s11 }
  0x47   : > { %s1102_s18 = scalar_lea.vmem (!%p1062_p3), [#allocation2], %s609_s13  ;;  %p1207_p7 = scmp.ne.s32.totalorder (!%p1062_p3), %s1203_s24, 0 }
  0x4c   : > { %906 = dma.done.wait (%p1207_p7), %s214_s6, 128  }
  0x4d   : > { %908 = vsyncadd (%p1207_p7), %s214_s6, 4294967168  ;;  %s610_s8 = sshll.u32 %s213_s11, 7  ;;  %s223_s7 = scalar_lea.sflag [#allocation6], %s213_s11 }
  0x4e   : > { %s1108_s25 = scalar_lea.vmem [#allocation5], %s610_s8 }
  0x4f   : > { %910 = dma.done.wait (%p1207_p7), %s223_s7, 2048  }
  0x50   : > { %912 = vsyncadd (%p1207_p7), %s223_s7, 4294965248  ;;  %v943_v0 = vmov 0.0   ;;  %vm944_vm0 = vmmov 0   ;;  %v761_v1 = vld [vmem:[%s1108_s25 + $0x4] ss:$8 sps:$4 sm:$0xff]   ;;  %p254_p8 = scmp.lt.s32.totalorder %s991_s19, 1 }
  0x51   : > { %657 = vmatprep.subr.bf16.mxu0 %v943_v0  ;;  %677 = vmatprep.subr.bf16.mxu1 %v943_v0  ;;  %v762_v2 = vld [vmem:[%s1108_s25] ss:$8 sps:$4 sm:$0xff]   ;;  %v763_v3 = vld [vmem:[%s1108_s25 + $0x14] ss:$8 sps:$4 sm:$0xff]   ;;  %v764_v4 = vld [vmem:[%s1108_s25 + $0x10] ss:$8 sps:$4 sm:$0xff]  }
  0x52   : > { %673 = vmatprep.mubr.msk.bf16.mxu0 %vm944_vm0, %v943_v0  ;;  %693 = vmatprep.mubr.msk.bf16.mxu1 %vm944_vm0, %v943_v0  ;;  %v765_v5 = vld [vmem:[%s1108_s25 + $0x24] ss:$8 sps:$4 sm:$0xff]   ;;  %v766_v6 = vld [vmem:[%s1108_s25 + $0x20] ss:$8 sps:$4 sm:$0xff]   ;;  %v767_v7 = vld [vmem:[%s1108_s25 + $0x34] ss:$8 sps:$4 sm:$0xff]  }
  0x53   : > { %658 = vmatpush3.bf16.xpose.msra.mxu0 %v761_v1  ;;  %678 = vmatpush3.bf16.xpose.msra.mxu1 %v762_v2  ;;  %v768_v8 = vld [vmem:[%s1108_s25 + $0x30] ss:$8 sps:$4 sm:$0xff]   ;;  %v769_v9 = vld [vmem:[%s1108_s25 + $0x44] ss:$8 sps:$4 sm:$0xff]   ;;  %v770_v10 = vld [vmem:[%s1108_s25 + $0x40] ss:$8 sps:$4 sm:$0xff]  }
  0x54   : > { %659 = vmatprep.subr.bf16.mxu0 %v943_v0  ;;  %679 = vmatprep.subr.bf16.mxu1 %v943_v0  ;;  %v771_v11 = vld [vmem:[%s1108_s25 + $0x54] ss:$8 sps:$4 sm:$0xff]   ;;  %v772_v12 = vld [vmem:[%s1108_s25 + $0x50] ss:$8 sps:$4 sm:$0xff]   ;;  %v773_v13 = vld [vmem:[%s1108_s25 + $0x64] ss:$8 sps:$4 sm:$0xff]  }
  0x55   : > { %v774_v14 = vld [vmem:[%s1108_s25 + $0x60] ss:$8 sps:$4 sm:$0xff]   ;;  %v775_v15 = vld [vmem:[%s1108_s25 + $0x74] ss:$8 sps:$4 sm:$0xff]   ;;  %v776_v16 = vld [vmem:[%s1108_s25 + $0x70] ss:$8 sps:$4 sm:$0xff]  }
  0x56   : > { %v611_v17 = vld [vmem:[%s1102_s18 + $0x4] sm:$0xf]  ;;  %v258_v18 = vld [vmem:[%s1102_s18] sm:$0xf]  ;;  %s255_s24 = scalar_select %p254_p8, %s991_s19, 1 }
  0x57   : > { %p629_p11 = scmp.ne.s32.totalorder %s991_s19, 0 }
  0x58   : > { %s256_s14 = scalar_lea.vmem %s1199_s2, %s255_s24 }
  0x59   : > { %v628_v21 = vld [vmem:[%s256_s14] ss:$0 sm:$0xff] }
  0x5b   : > { %660 = vmatpush3.bf16.xpose.msra.mxu0 %v763_v3  ;;  %680 = vmatpush3.bf16.xpose.msra.mxu1 %v764_v4 }
  0x5c   : > { %661 = vmatprep.subr.bf16.mxu0 %v943_v0  ;;  %681 = vmatprep.subr.bf16.mxu1 %v943_v0 }
  0x63   : > { %662 = vmatpush3.bf16.xpose.msra.mxu0 %v765_v5  ;;  %682 = vmatpush3.bf16.xpose.msra.mxu1 %v766_v6 }
  0x64   : > { %663 = vmatprep.subr.bf16.mxu0 %v943_v0  ;;  %683 = vmatprep.subr.bf16.mxu1 %v943_v0 }
  0x6b   : > { %664 = vmatpush3.bf16.xpose.msra.mxu0 %v767_v7  ;;  %684 = vmatpush3.bf16.xpose.msra.mxu1 %v768_v8 }
  0x6c   : > { %665 = vmatprep.subr.bf16.mxu0 %v943_v0  ;;  %685 = vmatprep.subr.bf16.mxu1 %v943_v0 }
  0x73   : > { %666 = vmatpush3.bf16.xpose.msra.mxu0 %v769_v9  ;;  %686 = vmatpush3.bf16.xpose.msra.mxu1 %v770_v10 }
  0x74   : > { %667 = vmatprep.subr.bf16.mxu0 %v943_v0  ;;  %687 = vmatprep.subr.bf16.mxu1 %v943_v0 }
  0x7b   : > { %668 = vmatpush3.bf16.xpose.msra.mxu0 %v771_v11  ;;  %688 = vmatpush3.bf16.xpose.msra.mxu1 %v772_v12 }
  0x7c   : > { %669 = vmatprep.subr.bf16.mxu0 %v943_v0  ;;  %689 = vmatprep.subr.bf16.mxu1 %v943_v0 }
  0x83   : > { %670 = vmatpush3.bf16.xpose.msra.mxu0 %v773_v13  ;;  %690 = vmatpush3.bf16.xpose.msra.mxu1 %v774_v14 }
  0x84   : > { %671 = vmatprep.subr.bf16.mxu0 %v943_v0  ;;  %691 = vmatprep.subr.bf16.mxu1 %v943_v0 }
  0x8b   : > { %672 = vmatpush3.bf16.xpose.msra.mxu0 %v775_v15  ;;  %692 = vmatpush3.bf16.xpose.msra.mxu1 %v776_v16 }
  0x92   : > { %674 = vmatmul.mubr.bf16.vlgmr.msra.gmra.mrb[0].mxu0 %v611_v17  ;;  %694 = vmatmul.mubr.bf16.vlgmr.msra.gmra.mrb[0].mxu1 %v258_v18 }
 0x164   : > { %481 = sbr.rel (%p629_p11) target bundleno = 365 (0x16d), region = 44 }
 0x165   : > { %v375_v19 = vpop.f32.mrb[0].mxu0  ;;  %v463_v20 = vpop.f32.mrb[0].mxu1 }
 0x166   : > { %v675_v22 = vpop.f32.mrb[1].mxu0  ;;  %v464_v23 = vadd.f32 %v463_v20, %v375_v19  ;;  %v695_v24 = vpop.f32.mrb[1].mxu1 }
 0x167   : > { %v378_v25 = vpop.f32.mrb[2].mxu0  ;;  %v466_v26 = vpop.f32.mrb[2].mxu1 }
 0x168   : > { %v676_v27 = vpop.f32.mrb[3].mxu0  ;;  %v476_v28 = vadd.f32 %v628_v21, %v464_v23  ;;  %v696_v29 = vpop.f32.mrb[3].mxu1 }
 0x16a   : > { %v477_v30 = vmax.f32 %v476_v28, 0.0 }
 0x16c   : > { %482 = vst [vmem:[#allocation7] sm:$0xff] %v477_v30 }
 0x16d PF: > { %p630_p3 = scmp.ne.s32.totalorder %s991_s19, 1 }
 0x16e   : > { %487 = vst [vmem:[#allocation8] sm:$0xff] (!%p630_p3), %v477_v30 }
 0x16f   : > { %486 = sbr.rel (%p630_p3) target bundleno = 374 (0x176), region = 48 }
 0x176 PF: > { %p717_p6 = scmp.eq.s32.totalorder %s991_s19, 1  ;;  %s945_s30 = smov [#allocation7]  }
 0x177   : > { %s495_s15 = sshll.u32 %s945_s30, 4  ;;  %s946_s21 = smov [#allocation8]   ;;  %s496_s15 = int_to_ptr.vmem [resolvable:$true] %s495_s15 }
 0x178   : > { %s506_s22 = sshll.u32 %s946_s21, 4  ;;  %s837_s26 = scalar_lea.vmem %s496_s15, 128  ;;  %s507_s22 = int_to_ptr.vmem [resolvable:$true] %s506_s22 }
 0x179   : > { %p838_p1 = scmp.ne.s32.totalorder %s496_s15, %s837_s26  ;;  %p844_p9 = scmp.lt.s32.totalorder %s496_s15, %s496_s15 }
 0x17a   : > { %p845_p4 = scmp.lt.s32.totalorder %s837_s26, %s837_s26 }
 0x17b   : > { %p839_p2 = pnand %p838_p1, %p717_p6 }
 0x17c   : > { %p846_p5 = por %p845_p4, %p844_p9 }
 0x17d   : > { %p840_p13 = pneg %p839_p2 }
 0x17f   : > { %p847_p10 = pnand %p846_p5, %p840_p13 }
 0x181   : > { %850 = shalt.err (!%p847_p10)
}
 0x182   : > { %s851_s29 = scalar_lea.hbm %s1200_s3, 128 }
 0x183   : > { %p852_p12 = scmp.ne.s32.totalorder %s1200_s3, %s851_s29  ;;  %p857_p8 = scmp.lt.u32.totalorder %s851_s29, %s1200_s3 }
 0x185   : > { %p853_p0 = pnand %p852_p12, %p717_p6 }
 0x187   : > { %p854_p7 = pneg %p853_p0 }
 0x189   : > { %p859_p11 = pnand %p857_p8, %p854_p7 }
 0x18b   : > { %862 = shalt.err (!%p859_p11)
}
 0x18c   : > { %702 = dma.vmem_to_hbm [thread:$0]  (%p717_p6), %s496_s15, 128, %s1200_s3, [#allocation4]  }
 0x18d   : > { %s863_s8 = scalar_lea.vmem %s507_s22, 128  ;;  %p870_p13 = scmp.lt.s32.totalorder %s507_s22, %s507_s22 }
 0x18e   : > { %p864_p3 = scmp.ne.s32.totalorder %s507_s22, %s863_s8  ;;  %p871_p9 = scmp.lt.s32.totalorder %s863_s8, %s863_s8 }
 0x190   : > { %p865_p1 = pnand %p864_p3, %p717_p6  ;;  %p872_p4 = por %p871_p9, %p870_p13 }
 0x192   : > { %p866_p2 = pneg %p865_p1 }
 0x194   : > { %p873_p5 = pnand %p872_p4, %p866_p2 }
 0x196   : > { %876 = shalt.err (!%p873_p5)
}
 0x197   : > { %s877_s24 = scalar_lea.hbm %s1201_s4, 128 }
 0x198   : > { %p878_p10 = scmp.ne.s32.totalorder %s1201_s4, %s877_s24  ;;  %p883_p7 = scmp.lt.u32.totalorder %s877_s24, %s1201_s4 }
 0x19a   : > { %p879_p12 = pnand %p878_p10, %p717_p6 }
 0x19c   : > { %p880_p0 = pneg %p879_p12 }
 0x19e   : > { %p885_p8 = pnand %p883_p7, %p880_p0 }
 0x1a0   : > { %888 = shalt.err (!%p885_p8)
}
 0x1a1   : > { %704 = dma.vmem_to_hbm [thread:$0]  (%p717_p6), %s507_s22, 128, %s1201_s4, [#allocation9]  }
 0x1a2   : > { %914 = dma.done.wait (%p717_p6), [#allocation4], 128  }
 0x1a3   : > { %916 = vsyncadd (%p717_p6), [#allocation4], 4294967168 }
 0x1a4   : > { %918 = dma.done.wait (%p717_p6), [#allocation9], 128  }
 0x1a5   : > { %920 = vsyncadd (%p717_p6), [#allocation9], 4294967168 }
 0x1a6 PF: > { %p20_p11 = scmp.ge.s32.totalorder %s994_s20, 4   ;;  %s1208_s15 = smov %s927_s16 }
 0x1a7   : > { %s1209_s16 = smov %s931_s17  ;;  %s1210_s17 = smov %s1004_s23 }
 0x1a8   : > { %s1211_s18 = smov %s994_s20  ;;  %22 = sbr.rel (!%p20_p11) target bundleno = 7 (0x7), region = 102 }
 0x1af   :  { %523 = vsyncpa [#allocation3], 1 }
 0x1b0   :  { %525 = vsyncpa [#allocation3 + $0x1], 1 }
 0x1b1   :  { %526 = vsyncpa [#allocation6], 1 }
 0x1b2   :  { %528 = vsyncpa [#allocation6 + $0x1], 1 }
 0x1b3   :  { %529 = vsyncpa [#allocation4], 1 }
 0x1b4   :  { %531 = vsyncpa [#allocation4 + $0x1], 1 }
 0x1b5   :  { %532 = vsyncpa [#allocation9], 1 }

</bundles_post_ra>
